<compile_context>
chip_gen: v7x
topology: tpu7x:2x2x1
jax: 0.10.0
libtpu: 0.0.40
codegen_flags: <defaults>
</compile_context>

<pallas_src>
import functools

import jax
import jax.numpy as jnp
from jax.experimental import pallas as pl
from jax.experimental.pallas import tpu as pltpu


def _round_up(a, m):
    return ((a + m - 1) // m) * m


def _sublane(itemsize):
    # Sublane tile for the second-to-last dim as a function of element size.
    return {4: 8, 2: 16, 1: 32}.get(itemsize, 8)


def _deep_mxu():
    # v6e / v7x have 256-deep MXUs -> prefer one fused K=Din matmul.
    try:
        kind = jax.devices()[0].device_kind.lower()
    except Exception:
        return False
    return ("v6" in kind) or ("v7" in kind)


def _spec(shape, index_map, buffers=2):
    # Resident (constant block-index) operands only need a single VMEM buffer.
    if buffers == 2:
        return pl.BlockSpec(shape, index_map)
    try:
        return pl.BlockSpec(shape, index_map, pipeline_mode=pl.Buffered(buffers))
    except Exception:  # older jax without pipeline_mode: fall back to default
        return pl.BlockSpec(shape, index_map)


def _split_kernel(x_ref, y_ref, wx_ref, wy_ref, b_ref, o_ref):
    # out = x @ w_x + y @ w_y + b  ==  cat([x, y], 1) @ w + b
    acc = jnp.dot(x_ref[...], wx_ref[...], preferred_element_type=jnp.float32)
    acc = acc + jnp.dot(y_ref[...], wy_ref[...], preferred_element_type=jnp.float32)
    o_ref[...] = (acc + b_ref[...]).astype(o_ref.dtype)


def _fused_kernel(x_ref, y_ref, w_ref, b_ref, o_ref, xy_ref, *, dx):
    # x/y blocks change only with the batch grid axis (axis 0); the output
    # column axis (axis 1) is innermost, so refresh the concat scratch only
    # when a new batch block arrives.
    @pl.when(pl.program_id(1) == 0)
    def _():
        xy_ref[:, :dx] = x_ref[...].astype(xy_ref.dtype)
        xy_ref[:, dx:] = y_ref[...].astype(xy_ref.dtype)

    acc = jnp.dot(xy_ref[...], w_ref[...], preferred_element_type=jnp.float32)
    o_ref[...] = (acc + b_ref[...]).astype(o_ref.dtype)


def concat_fusion(x, y, w, b, *, block_b=None, fuse_k=None, compute_dtype=None):
    """ConcatFusion.forward: returns (x, y, cat([x, y], 1) @ w + b).

    x: (B, Dx), y: (B, Dy), w: (Dx+Dy, O) (== torch weight.T), b: (O,).
    """
    B, Dx = x.shape
    By, Dy = y.shape
    Din, O = w.shape
    assert By == B and Din == Dx + Dy and b.shape == (O,)

    out_dtype = x.dtype
    if compute_dtype is not None:
        x_in = x.astype(compute_dtype)
        y_in = y.astype(compute_dtype)
        w_in = w.astype(compute_dtype)
    else:
        x_in, y_in, w_in = x, y, w
    b2 = b.astype(jnp.float32).reshape(1, O)  # bias added in f32 accumulator

    in_item = jnp.dtype(x_in.dtype).itemsize
    w_item = jnp.dtype(w_in.dtype).itemsize
    out_item = jnp.dtype(out_dtype).itemsize
    sub = _sublane(in_item)

    if fuse_k is None:
        fuse_k = _deep_mxu() and (Dx % 128 == 0)

    # ---- Output-column tiling, only when the weight is too big to keep fully
    # resident (matters on v7x's 64 MiB VMEM). No O padding / output slicing:
    # ragged last blocks read garbage columns whose stores are masked.
    if Din * O * w_item > (16 << 20) and O >= 256:
        block_o = 256 if O < 1024 else 512
    else:
        block_o = O
    n_o = pl.cdiv(O, block_o)

    # ---- Batch tiling: no wrapper-side padding (ragged last block is fine).
    # Keep the block count even when >1 so both v7x TensorCores get work.
    if block_b is None:
        n_b_guess = max(1, -(-B // 512))
        if n_b_guess > 1 and n_b_guess % 2 == 1:
            n_b_guess += 1
        block_b = min(_round_up(-(-B // n_b_guess), sub), _round_up(B, sub))
    block_b = max(sub, _round_up(block_b, sub))

    res_buffers = 1 if n_o == 1 else 2  # weights resident only if O untiled

    def vmem_need(bb):
        need = 2 * bb * (Dx + Dy) * in_item                     # x, y (2 bufs)
        need += res_buffers * (Din * block_o * w_item + block_o * 4)  # w, bias
        need += 2 * bb * block_o * out_item                     # out (2 bufs)
        need += bb * block_o * 4                                # f32 acc temp
        if fuse_k:
            need += bb * Din * in_item                          # concat scratch
        return need

    while vmem_need(block_b) > (40 << 20) and block_b > sub:
        block_b = max(sub, _round_up(block_b // 2, sub))

    n_b = pl.cdiv(B, block_b)
    grid = (n_b, n_o)

    x_spec = pl.BlockSpec((block_b, Dx), lambda i, j: (i, 0))
    y_spec = pl.BlockSpec((block_b, Dy), lambda i, j: (i, 0))
    b_spec = _spec((1, block_o), lambda i, j: (0, j), buffers=res_buffers)
    out_spec = pl.BlockSpec((block_b, block_o), lambda i, j: (i, j))

    vmem_limit = min(int(vmem_need(block_b) * 1.5) + (2 << 20), 64 << 20)
    compiler_params = pltpu.CompilerParams(
        dimension_semantics=("parallel", "arbitrary"),
        vmem_limit_bytes=vmem_limit,
    )
    cost = pl.CostEstimate(
        flops=2 * B * Din * O,
        bytes_accessed=B * (Dx + Dy) * in_item
        + Din * O * w_item
        + O * 4
        + B * O * out_item,
        transcendentals=0,
    )

    if fuse_k:
        kernel = functools.partial(_fused_kernel, dx=Dx)
        in_specs = [
            x_spec,
            y_spec,
            _spec((Din, block_o), lambda i, j: (0, j), buffers=res_buffers),
            b_spec,
        ]
        scratch = [pltpu.VMEM((block_b, Din), x_in.dtype)]
        operands = (x_in, y_in, w_in, b2)
    else:
        kernel = _split_kernel
        in_specs = [
            x_spec,
            y_spec,
            _spec((Dx, block_o), lambda i, j: (0, j), buffers=res_buffers),
            _spec((Dy, block_o), lambda i, j: (0, j), buffers=res_buffers),
            b_spec,
        ]
        scratch = []
        operands = (x_in, y_in, w_in[:Dx], w_in[Dx:], b2)

    out = pl.pallas_call(
        kernel,
        out_shape=jax.ShapeDtypeStruct((B, O), out_dtype),
        grid_spec=pltpu.PrefetchScalarGridSpec(
            num_scalar_prefetch=0,
            grid=grid,
            in_specs=in_specs,
            out_specs=out_spec,
            scratch_shapes=scratch,
        ),
        compiler_params=compiler_params,
        cost_estimate=cost,
    )(*operands)

    return (x, y, out)


if __name__ == "__main__":
    # Small shapes consistent with the module (input_dim = Dx + Dy, output_dim = 100).
    B, Dx, Dy, O = 16, 128, 128, 100
    Din = Dx + Dy

    key = jax.random.PRNGKey(0)
    kx, ky, kw, kb = jax.random.split(key, 4)

    x = jax.random.normal(kx, (B, Dx), dtype=jnp.float32)
    y = jax.random.normal(ky, (B, Dy), dtype=jnp.float32)

    # nn.Linear(input_dim, output_dim): torch weight is (O, Din); we keep its
    # transpose (Din, O) plus the bias (O,).
    bound = 1.0 / (Din ** 0.5)
    w = jax.random.uniform(kw, (Din, O), dtype=jnp.float32, minval=-bound, maxval=bound)
    b = jax.random.uniform(kb, (O,), dtype=jnp.float32, minval=-bound, maxval=bound)

    x_out, y_out, out = concat_fusion(x, y, w, b)
    jax.block_until_ready(out)

    # Pure-JAX reference.
    ref = jnp.concatenate([x, y], axis=1) @ w + b
    assert out.shape == (B, O)
    assert jnp.allclose(out, ref, atol=1e-4, rtol=1e-4), float(jnp.max(jnp.abs(out - ref)))
    assert jnp.array_equal(x_out, x) and jnp.array_equal(y_out, y)

    print("KERNEL_OK")
</pallas_src>

<mosaic_0001>
module attributes {stable_mosaic.version = 11 : i64} {
  func.func @_split_kernel(%arg0: i32, %arg1: i32, %arg2: memref<16x128xf32, #tpu.memory_space<vmem>>, %arg3: memref<16x128xf32, #tpu.memory_space<vmem>>, %arg4: memref<128x100xf32, #tpu.memory_space<vmem>>, %arg5: memref<128x100xf32, #tpu.memory_space<vmem>>, %arg6: memref<1x100xf32, #tpu.memory_space<vmem>>, %arg7: memref<16x100xf32, #tpu.memory_space<vmem>>) attributes {dimension_semantics = [#tpu.dimension_semantics<parallel>, #tpu.dimension_semantics<arbitrary>], iteration_bounds = array<i64: 1, 1>, scalar_prefetch = 0 : i64, scratch_operands = 0 : i64, tpu.core_type = #tpu.core_type<tc>, window_params = [{transform_indices = @transform_0, window_bounds = array<i64: 16, 128>}, {transform_indices = @transform_1, window_bounds = array<i64: 16, 128>}, {pipeline_mode = #tpu.pipeline_mode<synchronous>, transform_indices = @transform_2, window_bounds = array<i64: 128, 100>}, {pipeline_mode = #tpu.pipeline_mode<synchronous>, transform_indices = @transform_3, window_bounds = array<i64: 128, 100>}, {pipeline_mode = #tpu.pipeline_mode<synchronous>, transform_indices = @transform_4, window_bounds = array<i64: 1, 100>}, {transform_indices = @transform_5, window_bounds = array<i64: 16, 100>}]} {
    %c0 = arith.constant 0 : index
    %c0_0 = arith.constant 0 : index
    %0 = vector.load %arg2[%c0, %c0_0] : memref<16x128xf32, #tpu.memory_space<vmem>>, vector<16x128xf32>
    %c0_1 = arith.constant 0 : index
    %c0_2 = arith.constant 0 : index
    %1 = vector.load %arg4[%c0_1, %c0_2] : memref<128x100xf32, #tpu.memory_space<vmem>>, vector<128x100xf32>
    %cst = arith.constant dense<0.000000e+00> : vector<16x100xf32>
    %2 = tpu.matmul %0, %1, %cst {dimension_numbers = #tpu.dot_dimension_numbers<[1], [0], [0], [1], [0, 0, 1, 1], [], []>} : vector<16x128xf32>, vector<128x100xf32>, vector<16x100xf32> -> vector<16x100xf32>
    %c0_3 = arith.constant 0 : index
    %c0_4 = arith.constant 0 : index
    %3 = vector.load %arg3[%c0_3, %c0_4] : memref<16x128xf32, #tpu.memory_space<vmem>>, vector<16x128xf32>
    %c0_5 = arith.constant 0 : index
    %c0_6 = arith.constant 0 : index
    %4 = vector.load %arg5[%c0_5, %c0_6] : memref<128x100xf32, #tpu.memory_space<vmem>>, vector<128x100xf32>
    %cst_7 = arith.constant dense<0.000000e+00> : vector<16x100xf32>
    %5 = tpu.matmul %3, %4, %cst_7 {dimension_numbers = #tpu.dot_dimension_numbers<[1], [0], [0], [1], [0, 0, 1, 1], [], []>} : vector<16x128xf32>, vector<128x100xf32>, vector<16x100xf32> -> vector<16x100xf32>
    %6 = arith.addf %2, %5 : vector<16x100xf32>
    %c0_8 = arith.constant 0 : index
    %c0_9 = arith.constant 0 : index
    %7 = vector.load %arg6[%c0_8, %c0_9] : memref<1x100xf32, #tpu.memory_space<vmem>>, vector<1x100xf32>
    %8 = vector.broadcast %7 : vector<1x100xf32> to vector<16x100xf32>
    %9 = arith.addf %6, %8 : vector<16x100xf32>
    %c0_10 = arith.constant 0 : index
    %c0_11 = arith.constant 0 : index
    %10 = vector.load %arg7[%c0_10, %c0_11] : memref<16x100xf32, #tpu.memory_space<vmem>>, vector<16x100xf32>
    tpu.vector_store %arg7[%c0_10, %c0_11], %9 {strides = array<i32>} : memref<16x100xf32, #tpu.memory_space<vmem>>, vector<16x100xf32>,
    return
  }
  func.func @transform_0(%arg0: i32, %arg1: i32) -> (i32, i32) {
    %c0_i32 = arith.constant 0 : i32
    %c0_i32_0 = arith.constant 0 : i32
    return %arg0, %c0_i32 : i32, i32
  }
  func.func @transform_1(%arg0: i32, %arg1: i32) -> (i32, i32) {
    %c0_i32 = arith.constant 0 : i32
    %c0_i32_0 = arith.constant 0 : i32
    return %arg0, %c0_i32 : i32, i32
  }
  func.func @transform_2(%arg0: i32, %arg1: i32) -> (i32, i32) {
    %c0_i32 = arith.constant 0 : i32
    %c0_i32_0 = arith.constant 0 : i32
    return %c0_i32, %arg1 : i32, i32
  }
  func.func @transform_3(%arg0: i32, %arg1: i32) -> (i32, i32) {
    %c0_i32 = arith.constant 0 : i32
    %c0_i32_0 = arith.constant 0 : i32
    return %c0_i32, %arg1 : i32, i32
  }
  func.func @transform_4(%arg0: i32, %arg1: i32) -> (i32, i32) {
    %c0_i32 = arith.constant 0 : i32
    %c0_i32_0 = arith.constant 0 : i32
    return %c0_i32, %arg1 : i32, i32
  }
  func.func @transform_5(%arg0: i32, %arg1: i32) -> (i32, i32) {
    %c0_i32 = arith.constant 0 : i32
    return %arg0, %arg1 : i32, i32
  }
}

</mosaic_0001>

<bundles_post_ra>
// kernel: tpu_custom_call.1
= control target key start
LH: loop header
LB: loop body
LE: loop exit
PB: predicated region body
PF: predicated region fallthrough
CT: control target
= control target key end

     0   :  { %s591_s0 = inlined_call_operand.vmem [shape: f32[16,128], index: 0, kind: input, shape index: {}]   ;;  %s592_s1 = inlined_call_operand.vmem [shape: f32[16,128], index: 1, kind: input, shape index: {}]   ;;  %s593_s2 = inlined_call_operand.vmem [shape: f32[128,100], index: 2, kind: input, shape index: {}]   ;;  %s594_s3 = inlined_call_operand.vmem [shape: f32[128,100], index: 3, kind: input, shape index: {}]   ;;  %s595_s4 = inlined_call_operand.vmem [shape: f32[1,100], index: 4, kind: input, shape index: {}]   ;;  %s596_s5 = inlined_call_operand.hbm [shape: f32[16,100], index: 5, kind: output, shape index: {}]  }
   0x1   :  { %v41_v0 = vld [vmem:[%s594_s3] sm:$0xff]  ;;  %v42_v1 = vld [vmem:[%s594_s3 + $0x8] sm:$0xff]  ;;  %v43_v5 = vld [vmem:[%s594_s3 + $0x10] sm:$0xff] }
   0x2   :  { %v23_v2 = vld [vmem:[%s593_s2] sm:$0xff]  ;;  %v342_v3 = vpack.c.bf16 %v42_v1, %v41_v0  ;;  %v24_v4 = vld [vmem:[%s593_s2 + $0x8] sm:$0xff]  ;;  %v44_v6 = vld [vmem:[%s594_s3 + $0x18] sm:$0xff] }
   0x3   :  { %v374_v7 = vpack.c.bf16 %v24_v4, %v23_v2  ;;  %v346_v8 = vpack.c.bf16 %v44_v6, %v43_v5  ;;  %v25_v9 = vld [vmem:[%s593_s2 + $0x10] sm:$0xff]  ;;  %v26_v10 = vld [vmem:[%s593_s2 + $0x18] sm:$0xff]  ;;  %v45_v11 = vld [vmem:[%s594_s3 + $0x20] sm:$0xff] }
   0x4   :  { %343 = vmatprep.subr.bf16.mxu1 %v342_v3  ;;  %v378_v12 = vpack.c.bf16 %v26_v10, %v25_v9  ;;  %v46_v13 = vld [vmem:[%s594_s3 + $0x28] sm:$0xff]  ;;  %v27_v14 = vld [vmem:[%s593_s2 + $0x20] sm:$0xff]  ;;  %v47_v18 = vld [vmem:[%s594_s3 + $0x30] sm:$0xff] }
   0x5   :  { %v28_v15 = vld [vmem:[%s593_s2 + $0x28] sm:$0xff]  ;;  %375 = vmatprep.subr.bf16.mxu0 %v374_v7  ;;  %345 = vmatpush3.bf16.msra.mxu1 %v342_v3  ;;  %v350_v16 = vpack.c.bf16 %v46_v13, %v45_v11  ;;  %v48_v19 = vld [vmem:[%s594_s3 + $0x38] sm:$0xff]  ;;  %v29_v20 = vld [vmem:[%s593_s2 + $0x30] sm:$0xff] }
   0x6   :  { %377 = vmatpush3.bf16.msra.mxu0 %v374_v7  ;;  %347 = vmatprep.subr.bf16.mxu1 %v346_v8  ;;  %v382_v17 = vpack.c.bf16 %v28_v15, %v27_v14  ;;  %v30_v21 = vld [vmem:[%s593_s2 + $0x38] sm:$0xff]  ;;  %v354_v22 = vpack.c.bf16 %v48_v19, %v47_v18  ;;  %v49_v24 = vld [vmem:[%s594_s3 + $0x40] sm:$0xff]  ;;  %v50_v25 = vld [vmem:[%s594_s3 + $0x48] sm:$0xff] }
   0x7   :  { %379 = vmatprep.subr.bf16.mxu0 %v378_v12  ;;  %v386_v23 = vpack.c.bf16 %v30_v21, %v29_v20  ;;  %v39_v26 = vld [vmem:[%s592_s1] sm:$0xff]  ;;  %v32_v28 = vld [vmem:[%s593_s2 + $0x48] sm:$0xff] }
   0x8   :  { %v31_v27 = vld [vmem:[%s593_s2 + $0x40] sm:$0xff]  ;;  %304 = vmatprep.mubr.f32.mxu1 %v39_v26 }
   0x9   :  { %349 = vmatpush3.bf16.msra.mxu1 %v346_v8  ;;  %v21_v29 = vld [vmem:[%s591_s0] sm:$0xff] }
   0xa   :  { %381 = vmatpush3.bf16.msra.mxu0 %v378_v12  ;;  %351 = vmatprep.subr.bf16.mxu1 %v350_v16 }
   0xb   :  { %383 = vmatprep.subr.bf16.mxu0 %v382_v17  ;;  %339 = vmatprep.mubr.f32.mxu0 %v21_v29 }
   0xd   :  { %353 = vmatpush3.bf16.msra.mxu1 %v350_v16 }
   0xe   :  { %10 = vsyncpa [#allocation3], 0  ;;  %385 = vmatpush3.bf16.msra.mxu0 %v382_v17  ;;  %355 = vmatprep.subr.bf16.mxu1 %v354_v22  ;;  %v358_v30 = vpack.c.bf16 %v50_v25, %v49_v24  ;;  %v390_v31 = vpack.c.bf16 %v32_v28, %v31_v27  ;;  %v51_v32 = vld [vmem:[%s594_s3 + $0x50] sm:$0xff]  ;;  %v52_v33 = vld [vmem:[%s594_s3 + $0x58] sm:$0xff]  ;;  %s435_s15 = smov [#allocation2]   ;;  %vm216_vm0 = vcmask 818176  }
   0xf   :  { %387 = vmatprep.subr.bf16.mxu0 %v386_v23  ;;  %v33_v34 = vld [vmem:[%s593_s2 + $0x50] sm:$0xff]  ;;  %v34_v35 = vld [vmem:[%s593_s2 + $0x58] sm:$0xff]  ;;  %v362_v36 = vpack.c.bf16 %v52_v33, %v51_v32  ;;  %v53_v38 = vld [vmem:[%s594_s3 + $0x60] sm:$0xff]  ;;  %s224_s16 = sshll.u32 %s435_s15, 4  ;;  %s225_s16 = int_to_ptr.vmem [resolvable:$true] %s224_s16 }
  0x10   :  { %v394_v37 = vpack.c.bf16 %v34_v35, %v33_v34  ;;  %v54_v39 = vld [vmem:[%s594_s3 + $0x68] sm:$0xff]  ;;  %v35_v40 = vld [vmem:[%s593_s2 + $0x60] sm:$0xff]  ;;  %v55_v44 = vld [vmem:[%s594_s3 + $0x70] sm:$0xff]  ;;  %p416_p1 = scmp.lt.s32.totalorder %s225_s16, %s225_s16 }
  0x11   :  { %357 = vmatpush3.bf16.msra.mxu1 %v354_v22  ;;  %v36_v41 = vld [vmem:[%s593_s2 + $0x68] sm:$0xff]  ;;  %v366_v42 = vpack.c.bf16 %v54_v39, %v53_v38  ;;  %v56_v45 = vld [vmem:[%s594_s3 + $0x78] sm:$0xff]  ;;  %v37_v46 = vld [vmem:[%s593_s2 + $0x70] sm:$0xff] }
  0x12   :  { %389 = vmatpush3.bf16.msra.mxu0 %v386_v23  ;;  %359 = vmatprep.subr.bf16.mxu1 %v358_v30  ;;  %v398_v43 = vpack.c.bf16 %v36_v41, %v35_v40  ;;  %v38_v47 = vld [vmem:[%s593_s2 + $0x78] sm:$0xff]  ;;  %v370_v48 = vpack.c.bf16 %v56_v45, %v55_v44  ;;  %v40_v50 = vld [vmem:[%s592_s1 + $0x8] sm:$0xff]  ;;  %v235_v54 = vld [vmem:[%s595_s4] ss:$0 sm:$0xff] }
  0x13   :  { %391 = vmatprep.subr.bf16.mxu0 %v390_v31  ;;  %v402_v49 = vpack.c.bf16 %v38_v47, %v37_v46  ;;  %v22_v51 = vld [vmem:[%s591_s0 + $0x8] sm:$0xff]  ;;  %s411_s0 = scalar_lea.vmem %s225_s16, 256 }
  0x14   :  { %p412_p0 = scmp.ne.s32.totalorder %s225_s16, %s411_s0  ;;  %p417_p2 = scmp.lt.s32.totalorder %s411_s0, %s411_s0 }
  0x15   :  { %361 = vmatpush3.bf16.msra.mxu1 %v358_v30 }
  0x16   :  { %393 = vmatpush3.bf16.msra.mxu0 %v390_v31  ;;  %363 = vmatprep.subr.bf16.mxu1 %v362_v36  ;;  %p418_p3 = por %p417_p2, %p416_p1 }
  0x17   :  { %395 = vmatprep.subr.bf16.mxu0 %v394_v37 }
  0x18   :  { %p419_p4 = pnand %p418_p3, %p412_p0 }
  0x19   :  { %365 = vmatpush3.bf16.msra.mxu1 %v362_v36 }
  0x1a   :  { %397 = vmatpush3.bf16.msra.mxu0 %v394_v37  ;;  %367 = vmatprep.subr.bf16.mxu1 %v366_v42 }
  0x1b   :  { %399 = vmatprep.subr.bf16.mxu0 %v398_v43 }
  0x1d   :  { %369 = vmatpush3.bf16.msra.mxu1 %v366_v42 }
  0x1e   :  { %401 = vmatpush3.bf16.msra.mxu0 %v398_v43  ;;  %371 = vmatprep.subr.bf16.mxu1 %v370_v48 }
  0x1f   :  { %403 = vmatprep.subr.bf16.mxu0 %v402_v49 }
  0x21   :  { %373 = vmatpush3.bf16.msra.mxu1 %v370_v48 }
  0x22   :  { %405 = vmatpush3.bf16.msra.mxu0 %v402_v49 }
  0x24   :  { %305 = vmatmul.mubr.f32.vlgmr.msra.gmra.mrb[0].mxu1 %v40_v50 }
  0x25   :  { %340 = vmatmul.mubr.f32.vlgmr.msra.gmra.mrb[0].mxu0 %v22_v51 }
  0xf7   :  { %v306_v52 = vpop.f32.mrb[0].mxu1 }
  0xf8   :  { %v341_v53 = vpop.f32.mrb[0].mxu0  ;;  %v123_v55 = vpop.f32.mrb[1].mxu1 }
  0xf9   :  { %v204_v56 = vadd.f32 %v341_v53, %v306_v52  ;;  %v198_v57 = vpop.f32.mrb[1].mxu0 }
  0xfa   :  { %v199_v58 = vadd.f32 %v198_v57, %v123_v55 }
  0xfb   :  { %v215_v59 = vadd.f32 %v235_v54, %v204_v56 }
  0xfc   :  { %v214_v60 = vadd.f32 %v235_v54, %v199_v58 }
  0xfd   :  { %218 = vst.msk [vmem:[#allocation2 + $0x8] sm:$0xff] %vm216_vm0, %v215_v59 }
  0xfe   :  { %217 = vst.msk [vmem:[#allocation2] sm:$0xff] %vm216_vm0, %v214_v60 }
  0xff   :  { %422 = shalt.err (!%p419_p4)
}
 0x100   :  { %s423_s17 = scalar_lea.hbm %s596_s5, 256 }
 0x101   :  { %p424_p5 = scmp.ne.s32.totalorder %s596_s5, %s423_s17  ;;  %p427_p6 = scmp.lt.u32.totalorder %s423_s17, %s596_s5 }
 0x103   :  { %p429_p7 = pnand %p427_p6, %p424_p5 }
 0x105   :  { %432 = shalt.err (!%p429_p7)
}
 0x106   :  { %s436_s22 = smov 128   ;;  %s437_s23 = smov 8  }
 0x107   :  { %230 = dma.vmem_to_hbm [thread:$0]  %s225_s16, 256, %s596_s5, [#allocation3], %s436_s22, %s436_s22, %s437_s23  }
 0x108   :  { %433 = dma.done.wait [#allocation3], 256  }
 0x109   :  { %434 = vsyncadd [#allocation3], 4294967040 }
 0x10a   :  { %234 = vsyncpa [#allocation3], 1 }

</bundles_post_ra>
